<compile_context>
chip_gen: v7x
topology: tpu7x:2x2x1
jax: 0.10.0
libtpu: 0.0.40
codegen_flags: <defaults>
</compile_context>

<pallas_src>
import functools

import jax
import jax.numpy as jnp
from jax.experimental import pallas as pl
from jax.experimental.pallas import tpu as pltpu


def _fullk_kernel(wt_ref, y_ref, b_ref, o_ref):
    # wt_ref: (tm, Kp) strip of W^T  -- resident across the inner j axis
    # y_ref : (Kp, tn) strip of x[:, col_idxs] (padded)
    # b_ref : (1, tn)  bias tile
    # o_ref : (tm, tn) output tile
    # Bias subtract on the VPU hides under the MXU push; do NOT pre-subtract in
    # the wrapper (that would be an extra un-hidden HBM pass over Y).
    y = y_ref[...] - b_ref[...]
    o_ref[...] = jnp.dot(
        wt_ref[...], y, preferred_element_type=jnp.float32
    ).astype(o_ref.dtype)


def _ktiled_kernel(wt_ref, y_ref, b_ref, o_ref):
    # Grid: (i, j, k), k is the reduction axis.  The output block is resident
    # across k (its index_map ignores k) and is f32, so accumulate directly
    # into o_ref -- no scratch accumulator, no epilogue copy.
    @pl.when(pl.program_id(2) == 0)
    def _zero():
        o_ref[...] = jnp.zeros_like(o_ref)

    y = y_ref[...] - b_ref[...]
    o_ref[...] += jnp.dot(wt_ref[...], y, preferred_element_type=jnp.float32)


def _round_up(n, m):
    return ((n + m - 1) // m) * m


def _pick_tile(n, candidates):
    """Largest candidate that evenly divides n (n is always a multiple of 128)."""
    for c in candidates:
        if c <= n and n % c == 0:
            return c
    return n


def _vmem_capacity_bytes():
    # Per-generation gating: 128 MiB per TC on v5e/v6e, 64 MiB on v7x.
    try:
        return int(pltpu.get_tpu_info().vmem_capacity_bytes)
    except Exception:
        return 64 * 1024 * 1024  # conservative: v7x per-TensorCore VMEM


@functools.partial(jax.jit, static_argnames=("col_idxs",))
def _invert_embedding_jit(x, weight, bias, col_idxs):
    batch = x.shape[0]
    dim = weight.shape[0]

    idx = jnp.asarray(col_idxs, dtype=jnp.int32)
    # TODO(synk): fuse this column gather into the kernel (strided pl.ds for
    # fixed-stride col_idxs, scalar-prefetch gather otherwise) to save one
    # (batch, dim) HBM round trip; arbitrary lane-axis gathers inside Mosaic
    # are not reliably supported, so it stays as XLA glue.
    y = jnp.take(x, idx, axis=1)  # (batch, dim) == x[:, col_idxs]

    # One-time transpose of W in the wrapper -> canonical (M,K)@(K,N) MXU
    # contraction inside the kernel, guaranteed no per-tile XLU transpose.
    w_t = weight.T  # (in_features, out_features) == (M, K); K == batch enforced

    # Pad every axis to a multiple of 128: lane-dense (8,128)-aligned tiles,
    # unmasked stores, parallel i/j grid never collapses for odd dims.
    m_pad = _round_up(dim, 128)
    n_pad = _round_up(dim, 128)
    k_pad = _round_up(batch, 128)

    w_t = jnp.pad(w_t, ((0, m_pad - dim), (0, k_pad - batch)))
    y = jnp.pad(y, ((0, k_pad - batch), (0, n_pad - dim)))
    b2d = jnp.pad(bias, (0, n_pad - dim)).reshape(1, n_pad)

    vmem_cap = _vmem_capacity_bytes()
    budget = int(0.6 * vmem_cap)  # leave headroom for compiler scratch

    tm = _pick_tile(m_pad, (512, 256, 128))
    tn = _pick_tile(n_pad, (512, 256, 128))

    # Double-buffered footprint of the full-K layout (Pallas double-buffers
    # every BlockSpec'd operand; we keep the default depth -- the kernel is
    # bandwidth-bound, deeper pipelining would only burn VMEM).
    fullk_bytes = 4 * (2 * tm * k_pad + 2 * k_pad * tn + 2 * tn + 2 * tm * tn)
    flops = 2 * m_pad * n_pad * k_pad

    if fullk_bytes <= budget:
        # Full-K path: no reduction axis, no accumulator.  j innermost + W^T
        # index_map depending only on i => W is DMA'd from HBM exactly once;
        # only Y is re-read (m_pad // tm times).
        grid = (m_pad // tm, n_pad // tn)
        bytes_accessed = 4 * (
            m_pad * k_pad + k_pad * n_pad * (m_pad // tm) + n_pad + m_pad * n_pad
        )
        out = pl.pallas_call(
            _fullk_kernel,
            out_shape=jax.ShapeDtypeStruct((m_pad, n_pad), jnp.float32),
            grid_spec=pltpu.PrefetchScalarGridSpec(
                num_scalar_prefetch=0,
                grid=grid,
                in_specs=[
                    pl.BlockSpec((tm, k_pad), lambda i, j: (i, 0)),  # W^T strip
                    pl.BlockSpec((k_pad, tn), lambda i, j: (0, j)),  # Y strip
                    pl.BlockSpec((1, tn), lambda i, j: (0, j)),      # bias tile
                ],
                out_specs=pl.BlockSpec((tm, tn), lambda i, j: (i, j)),
            ),
            compiler_params=pltpu.CompilerParams(
                dimension_semantics=("parallel", "arbitrary"),
                vmem_limit_bytes=min(
                    max(int(1.25 * fullk_bytes) + (4 << 20), 16 << 20),
                    int(0.85 * vmem_cap),
                ),
            ),
            cost_estimate=pl.CostEstimate(
                flops=flops, transcendentals=0, bytes_accessed=bytes_accessed
            ),
        )(w_t, y, b2d)
    else:
        # K-tiled fallback for shapes whose full-K strips do not fit VMEM.
        tk = _pick_tile(k_pad, (1024, 512, 256, 128))
        grid = (m_pad // tm, n_pad // tn, k_pad // tk)
        ktiled_bytes = 4 * (2 * tm * tk + 2 * tk * tn + 2 * tn + 2 * tm * tn)
        bytes_accessed = 4 * (
            m_pad * k_pad * (n_pad // tn)
            + k_pad * n_pad * (m_pad // tm)
            + n_pad * (m_pad // tm)
            + m_pad * n_pad
        )
        out = pl.pallas_call(
            _ktiled_kernel,
            out_shape=jax.ShapeDtypeStruct((m_pad, n_pad), jnp.float32),
            grid_spec=pltpu.PrefetchScalarGridSpec(
                num_scalar_prefetch=0,
                grid=grid,
                in_specs=[
                    pl.BlockSpec((tm, tk), lambda i, j, k: (i, k)),  # W^T tile
                    pl.BlockSpec((tk, tn), lambda i, j, k: (k, j)),  # Y tile
                    pl.BlockSpec((1, tn), lambda i, j, k: (0, j)),   # bias tile
                ],
                out_specs=pl.BlockSpec((tm, tn), lambda i, j, k: (i, j)),
            ),
            compiler_params=pltpu.CompilerParams(
                dimension_semantics=("parallel", "parallel", "arbitrary"),
                vmem_limit_bytes=min(
                    max(int(1.25 * ktiled_bytes) + (4 << 20), 16 << 20),
                    int(0.85 * vmem_cap),
                ),
            ),
            cost_estimate=pl.CostEstimate(
                flops=flops, transcendentals=0, bytes_accessed=bytes_accessed
            ),
        )(w_t, y, b2d)

    return out[:dim, :dim]


def invert_embedding(x, weight, bias, col_idxs):
    """JAX wrapper reproducing InvertEmbedding.forward.

    x:        (batch, n_features) float32
    weight:   (dim, dim) float32  (torch Linear weight, (out_features, in_features))
    bias:     (dim,)     float32
    col_idxs: sequence of ints, len == dim
    returns   (dim, dim) float32  (requires batch == dim, as in the torch code)
    """
    col_idxs = tuple(int(c) for c in col_idxs)
    batch, n_features = x.shape
    dim = weight.shape[0]
    if len(col_idxs) != dim:
        raise ValueError(f"len(col_idxs)={len(col_idxs)} must equal dim={dim}")
    if any(c < 0 or c >= n_features for c in col_idxs):
        # torch would raise an index error; jnp.take would silently clip.
        raise ValueError("col_idxs contains out-of-range column indices")
    if batch != dim:
        raise ValueError(
            f"torch.matmul(W.T, x[:, col_idxs] - b) requires batch == dim "
            f"(got batch={batch}, dim={dim})"
        )
    return _invert_embedding_jit(x, weight, bias, col_idxs)


if __name__ == "__main__":
    # Small but lane-dense / (8,128)-aligned demo shapes: dim = 128 so the
    # (dim, dim) output uses full 128-lane stores.
    n_features = 256
    col_idxs = tuple(range(1, n_features, 2))  # dim = 128
    dim = len(col_idxs)
    batch = dim  # required by the original torch forward

    key = jax.random.PRNGKey(0)
    kx, kw, kb = jax.random.split(key, 3)

    # Deterministic init mimicking torch.nn.Linear default:
    # U(-1/sqrt(dim), 1/sqrt(dim)) for both weight and bias.
    bound = 1.0 / (dim ** 0.5)
    weight = jax.random.uniform(kw, (dim, dim), jnp.float32, -bound, bound)
    bias = jax.random.uniform(kb, (dim,), jnp.float32, -bound, bound)
    x = jax.random.normal(kx, (batch, n_features), jnp.float32)

    out = invert_embedding(x, weight, bias, col_idxs)
    out = jax.block_until_ready(out)

    # Pure-JAX reference check.
    y_ref = x[:, jnp.asarray(col_idxs)] - bias
    ref = weight.T @ y_ref
    assert out.shape == (dim, dim)
    assert jnp.allclose(out, ref, atol=1e-5, rtol=1e-5), float(
        jnp.max(jnp.abs(out - ref))
    )

    print("KERNEL_OK")
</pallas_src>

<mosaic_0001>
module attributes {stable_mosaic.version = 11 : i64} {
  func.func @_fullk_kernel(%arg0: i32, %arg1: i32, %arg2: memref<128x128xf32, #tpu.memory_space<vmem>>, %arg3: memref<128x128xf32, #tpu.memory_space<vmem>>, %arg4: memref<1x128xf32, #tpu.memory_space<vmem>>, %arg5: memref<128x128xf32, #tpu.memory_space<vmem>>) attributes {dimension_semantics = [#tpu.dimension_semantics<parallel>, #tpu.dimension_semantics<arbitrary>], iteration_bounds = array<i64: 1, 1>, scalar_prefetch = 0 : i64, scratch_operands = 0 : i64, tpu.core_type = #tpu.core_type<tc>, window_params = [{transform_indices = @transform_0, window_bounds = array<i64: 128, 128>}, {transform_indices = @transform_1, window_bounds = array<i64: 128, 128>}, {transform_indices = @transform_2, window_bounds = array<i64: 1, 128>}, {transform_indices = @transform_3, window_bounds = array<i64: 128, 128>}]} {
    %c0 = arith.constant 0 : index
    %c0_0 = arith.constant 0 : index
    %0 = vector.load %arg3[%c0, %c0_0] : memref<128x128xf32, #tpu.memory_space<vmem>>, vector<128x128xf32>
    %c0_1 = arith.constant 0 : index
    %c0_2 = arith.constant 0 : index
    %1 = vector.load %arg4[%c0_1, %c0_2] : memref<1x128xf32, #tpu.memory_space<vmem>>, vector<1x128xf32>
    %2 = vector.broadcast %1 : vector<1x128xf32> to vector<128x128xf32>
    %3 = arith.subf %0, %2 : vector<128x128xf32>
    %c0_3 = arith.constant 0 : index
    %c0_4 = arith.constant 0 : index
    %4 = vector.load %arg2[%c0_3, %c0_4] : memref<128x128xf32, #tpu.memory_space<vmem>>, vector<128x128xf32>
    %cst = arith.constant dense<0.000000e+00> : vector<128x128xf32>
    %5 = tpu.matmul %4, %3, %cst {dimension_numbers = #tpu.dot_dimension_numbers<[1], [0], [0], [1], [0, 0, 1, 1], [], []>} : vector<128x128xf32>, vector<128x128xf32>, vector<128x128xf32> -> vector<128x128xf32>
    %c0_5 = arith.constant 0 : index
    %c0_6 = arith.constant 0 : index
    %6 = vector.load %arg5[%c0_5, %c0_6] : memref<128x128xf32, #tpu.memory_space<vmem>>, vector<128x128xf32>
    tpu.vector_store %arg5[%c0_5, %c0_6], %5 {strides = array<i32>} : memref<128x128xf32, #tpu.memory_space<vmem>>, vector<128x128xf32>,
    return
  }
  func.func @transform_0(%arg0: i32, %arg1: i32) -> (i32, i32) {
    %c0_i32 = arith.constant 0 : i32
    %c0_i32_0 = arith.constant 0 : i32
    return %arg0, %c0_i32 : i32, i32
  }
  func.func @transform_1(%arg0: i32, %arg1: i32) -> (i32, i32) {
    %c0_i32 = arith.constant 0 : i32
    %c0_i32_0 = arith.constant 0 : i32
    return %c0_i32, %arg1 : i32, i32
  }
  func.func @transform_2(%arg0: i32, %arg1: i32) -> (i32, i32) {
    %c0_i32 = arith.constant 0 : i32
    %c0_i32_0 = arith.constant 0 : i32
    return %c0_i32, %arg1 : i32, i32
  }
  func.func @transform_3(%arg0: i32, %arg1: i32) -> (i32, i32) {
    %c0_i32 = arith.constant 0 : i32
    return %arg0, %arg1 : i32, i32
  }
}

</mosaic_0001>

<bundles_post_ra>
// kernel: _invert_embedding_jit.1
= control target key start
LH: loop header
LB: loop body
LE: loop exit
PB: predicated region body
PF: predicated region fallthrough
CT: control target
= control target key end

     0   :  { %s563_s0 = inlined_call_operand.vmem [shape: f32[128,128], index: 0, kind: input, shape index: {}]   ;;  %s564_s1 = inlined_call_operand.vmem [shape: f32[128,128], index: 1, kind: input, shape index: {}]   ;;  %s565_s2 = inlined_call_operand.vmem [shape: f32[1,128], index: 2, kind: input, shape index: {}]   ;;  %s566_s3 = inlined_call_operand.hbm [shape: f32[128,128], index: 3, kind: output, shape index: {}]  }
   0x1   :  { %v15_v0 = vld [vmem:[%s564_s1] sm:$0xff]  ;;  %v16_v1 = vld [vmem:[%s564_s1 + $0x8] sm:$0xff]  ;;  %v17_v5 = vld [vmem:[%s564_s1 + $0x10] sm:$0xff] }
   0x2   :  { %v443_v2 = vld [vmem:[%s565_s2] ss:$0 sm:$0xff]  ;;  %v18_v6 = vld [vmem:[%s564_s1 + $0x18] sm:$0xff]  ;;  %v20_v10 = vld [vmem:[%s564_s1 + $0x28] sm:$0xff] }
   0x3   :  { %v38_v3 = vsub.f32 %v15_v0, %v443_v2  ;;  %v39_v4 = vsub.f32 %v16_v1, %v443_v2  ;;  %v19_v7 = vld [vmem:[%s564_s1 + $0x20] sm:$0xff]  ;;  %v40_v8 = vsub.f32 %v17_v5, %v443_v2  ;;  %v41_v9 = vsub.f32 %v18_v6, %v443_v2  ;;  %v21_v15 = vld [vmem:[%s564_s1 + $0x30] sm:$0xff]  ;;  %v22_v16 = vld [vmem:[%s564_s1 + $0x38] sm:$0xff] }
   0x4   :  { %v42_v12 = vsub.f32 %v19_v7, %v443_v2  ;;  %v43_v13 = vsub.f32 %v20_v10, %v443_v2  ;;  %v54_v17 = vld [vmem:[%s563_s0] sm:$0xff]  ;;  %v44_v20 = vsub.f32 %v21_v15, %v443_v2  ;;  %v45_v21 = vsub.f32 %v22_v16, %v443_v2  ;;  %v24_v23 = vld [vmem:[%s564_s1 + $0x48] sm:$0xff] }
   0x5   :  { %v336_v11 = vpack.c.bf16 %v39_v4, %v38_v3  ;;  %v340_v14 = vpack.c.bf16 %v41_v9, %v40_v8  ;;  %v62_v18 = vld [vmem:[%s563_s0 + $0x40] sm:$0xff]  ;;  %312 = vmatprep.mubr.f32.mxu0 %v54_v17  ;;  %v47_v26 = vsub.f32 %v24_v23, %v443_v2 }
   0x6   :  { %v344_v19 = vpack.c.bf16 %v43_v13, %v42_v12  ;;  %v23_v22 = vld [vmem:[%s564_s1 + $0x40] sm:$0xff]  ;;  %324 = vmatprep.mubr.f32.mxu1 %v62_v18  ;;  %v348_v24 = vpack.c.bf16 %v45_v21, %v44_v20 }
   0x7   :  { %337 = vmatprep.subr.bf16.mxu0 %v336_v11  ;;  %368 = vmatprep.subr.bf16.mxu1 %v336_v11  ;;  %v46_v25 = vsub.f32 %v23_v22, %v443_v2 }
   0x8   :  { %339 = vmatpush3.bf16.msra.mxu0 %v336_v11  ;;  %376 = vmatpush3.bf16.msra.mxu1 %v336_v11 }
   0x9   :  { %341 = vmatprep.subr.bf16.mxu0 %v340_v14  ;;  %369 = vmatprep.subr.bf16.mxu1 %v340_v14 }
   0xc   :  { %343 = vmatpush3.bf16.msra.mxu0 %v340_v14  ;;  %377 = vmatpush3.bf16.msra.mxu1 %v340_v14 }
   0xd   :  { %345 = vmatprep.subr.bf16.mxu0 %v344_v19  ;;  %370 = vmatprep.subr.bf16.mxu1 %v344_v19 }
   0xe   :  { %8 = vsyncpa [#allocation3], 0  ;;  %v25_v27 = vld [vmem:[%s564_s1 + $0x50] sm:$0xff]  ;;  %v26_v28 = vld [vmem:[%s564_s1 + $0x58] sm:$0xff]  ;;  %v352_v29 = vpack.c.bf16 %v47_v26, %v46_v25 }
   0xf   :  { %v48_v30 = vsub.f32 %v25_v27, %v443_v2  ;;  %v49_v31 = vsub.f32 %v26_v28, %v443_v2  ;;  %v27_v32 = vld [vmem:[%s564_s1 + $0x60] sm:$0xff]  ;;  %v28_v33 = vld [vmem:[%s564_s1 + $0x68] sm:$0xff]  ;;  %v29_v37 = vld [vmem:[%s564_s1 + $0x70] sm:$0xff] }
  0x10   :  { %347 = vmatpush3.bf16.msra.mxu0 %v344_v19  ;;  %378 = vmatpush3.bf16.msra.mxu1 %v344_v19  ;;  %v50_v35 = vsub.f32 %v27_v32, %v443_v2  ;;  %v51_v36 = vsub.f32 %v28_v33, %v443_v2  ;;  %v30_v38 = vld [vmem:[%s564_s1 + $0x78] sm:$0xff]  ;;  %v52_v40 = vsub.f32 %v29_v37, %v443_v2  ;;  %v55_v43 = vld [vmem:[%s563_s0 + $0x8] sm:$0xff]  ;;  %v56_v45 = vld [vmem:[%s563_s0 + $0x10] sm:$0xff] }
  0x11   :  { %349 = vmatprep.subr.bf16.mxu0 %v348_v24  ;;  %371 = vmatprep.subr.bf16.mxu1 %v348_v24  ;;  %v356_v34 = vpack.c.bf16 %v49_v31, %v48_v30  ;;  %v53_v41 = vsub.f32 %v30_v38, %v443_v2  ;;  %v63_v44 = vld [vmem:[%s563_s0 + $0x48] sm:$0xff]  ;;  %v64_v46 = vld [vmem:[%s563_s0 + $0x50] sm:$0xff]  ;;  %v57_v47 = vld [vmem:[%s563_s0 + $0x18] sm:$0xff] }
  0x12   :  { %v360_v39 = vpack.c.bf16 %v51_v36, %v50_v35  ;;  %v65_v48 = vld [vmem:[%s563_s0 + $0x58] sm:$0xff]  ;;  %v58_v49 = vld [vmem:[%s563_s0 + $0x20] sm:$0xff]  ;;  %v59_v51 = vld [vmem:[%s563_s0 + $0x28] sm:$0xff] }
  0x13   :  { %v364_v42 = vpack.c.bf16 %v53_v41, %v52_v40  ;;  %v66_v50 = vld [vmem:[%s563_s0 + $0x60] sm:$0xff]  ;;  %v67_v52 = vld [vmem:[%s563_s0 + $0x68] sm:$0xff]  ;;  %v60_v53 = vld [vmem:[%s563_s0 + $0x30] sm:$0xff] }
  0x14   :  { %351 = vmatpush3.bf16.msra.mxu0 %v348_v24  ;;  %379 = vmatpush3.bf16.msra.mxu1 %v348_v24  ;;  %v68_v54 = vld [vmem:[%s563_s0 + $0x70] sm:$0xff]  ;;  %v61_v55 = vld [vmem:[%s563_s0 + $0x38] sm:$0xff] }
  0x15   :  { %353 = vmatprep.subr.bf16.mxu0 %v352_v29  ;;  %372 = vmatprep.subr.bf16.mxu1 %v352_v29  ;;  %v69_v56 = vld [vmem:[%s563_s0 + $0x78] sm:$0xff]  ;;  %s411_s0 = smov [#allocation2]  }
  0x16   :  { %s236_s21 = sshll.u32 %s411_s0, 4  ;;  %s237_s21 = int_to_ptr.vmem [resolvable:$true] %s236_s21 }
  0x17   :  { %s387_s1 = scalar_lea.vmem %s237_s21, 2048  ;;  %p392_p1 = scmp.lt.s32.totalorder %s237_s21, %s237_s21 }
  0x18   :  { %355 = vmatpush3.bf16.msra.mxu0 %v352_v29  ;;  %380 = vmatpush3.bf16.msra.mxu1 %v352_v29  ;;  %p388_p0 = scmp.ne.s32.totalorder %s237_s21, %s387_s1  ;;  %p393_p2 = scmp.lt.s32.totalorder %s387_s1, %s387_s1 }
  0x19   :  { %357 = vmatprep.subr.bf16.mxu0 %v356_v34  ;;  %373 = vmatprep.subr.bf16.mxu1 %v356_v34 }
  0x1a   :  { %p394_p3 = por %p393_p2, %p392_p1 }
  0x1c   :  { %359 = vmatpush3.bf16.msra.mxu0 %v356_v34  ;;  %381 = vmatpush3.bf16.msra.mxu1 %v356_v34  ;;  %p395_p4 = pnand %p394_p3, %p388_p0 }
  0x1d   :  { %361 = vmatprep.subr.bf16.mxu0 %v360_v39  ;;  %374 = vmatprep.subr.bf16.mxu1 %v360_v39 }
  0x20   :  { %363 = vmatpush3.bf16.msra.mxu0 %v360_v39  ;;  %382 = vmatpush3.bf16.msra.mxu1 %v360_v39 }
  0x21   :  { %365 = vmatprep.subr.bf16.mxu0 %v364_v42  ;;  %375 = vmatprep.subr.bf16.mxu1 %v364_v42 }
  0x24   :  { %367 = vmatpush3.bf16.msra.mxu0 %v364_v42  ;;  %383 = vmatpush3.bf16.msra.mxu1 %v364_v42 }
  0x27   :  { %313 = vmatmul.mubr.f32.vlgmr.msra.gmra.mrb[0].mxu0 %v55_v43  ;;  %325 = vmatmul.mubr.f32.vlgmr.msra.gmra.mrb[0].mxu1 %v63_v44 }
  0x28   :  { %315 = vmatprep.mubr.f32.mxu0 %v56_v45  ;;  %327 = vmatprep.mubr.f32.mxu1 %v64_v46 }
  0x2b   :  { %316 = vmatmul.mubr.f32.gmra.mrb[2].mxu0 %v57_v47  ;;  %328 = vmatmul.mubr.f32.gmra.mrb[2].mxu1 %v65_v48 }
  0x2c   :  { %318 = vmatprep.mubr.f32.mxu0 %v58_v49  ;;  %330 = vmatprep.mubr.f32.mxu1 %v66_v50 }
  0x2f   :  { %319 = vmatmul.mubr.f32.gmra.mrb[4].mxu0 %v59_v51  ;;  %331 = vmatmul.mubr.f32.gmra.mrb[4].mxu1 %v67_v52 }
  0x30   :  { %321 = vmatprep.mubr.f32.mxu0 %v60_v53  ;;  %333 = vmatprep.mubr.f32.mxu1 %v68_v54 }
  0x33   :  { %322 = vmatmul.mubr.f32.gmra.mrb[6].mxu0 %v61_v55  ;;  %334 = vmatmul.mubr.f32.gmra.mrb[6].mxu1 %v69_v56 }
  0xfa   :  { %v314_v57 = vpop.f32.mrb[0].mxu0  ;;  %v326_v58 = vpop.f32.mrb[0].mxu1 }
  0xfb   :  { %216 = vst [vmem:[#allocation2 + $0x8] sm:$0xff] %v314_v57  ;;  %224 = vst [vmem:[#allocation2 + $0x48] sm:$0xff] %v326_v58  ;;  %v136_v59 = vpop.f32.mrb[1].mxu0  ;;  %v176_v60 = vpop.f32.mrb[1].mxu1 }
  0xfc   :  { %215 = vst [vmem:[#allocation2] sm:$0xff] %v136_v59  ;;  %223 = vst [vmem:[#allocation2 + $0x40] sm:$0xff] %v176_v60 }
  0xfe   :  { %v317_v61 = vpop.f32.mrb[2].mxu0  ;;  %v329_v62 = vpop.f32.mrb[2].mxu1 }
  0xff   :  { %218 = vst [vmem:[#allocation2 + $0x18] sm:$0xff] %v317_v61  ;;  %226 = vst [vmem:[#allocation2 + $0x58] sm:$0xff] %v329_v62  ;;  %v146_v63 = vpop.f32.mrb[3].mxu0  ;;  %v186_v0 = vpop.f32.mrb[3].mxu1 }
 0x100   :  { %217 = vst [vmem:[#allocation2 + $0x10] sm:$0xff] %v146_v63  ;;  %225 = vst [vmem:[#allocation2 + $0x50] sm:$0xff] %v186_v0 }
 0x102   :  { %v320_v1 = vpop.f32.mrb[4].mxu0  ;;  %v332_v2 = vpop.f32.mrb[4].mxu1 }
 0x103   :  { %220 = vst [vmem:[#allocation2 + $0x28] sm:$0xff] %v320_v1  ;;  %228 = vst [vmem:[#allocation2 + $0x68] sm:$0xff] %v332_v2  ;;  %v156_v3 = vpop.f32.mrb[5].mxu0  ;;  %v196_v4 = vpop.f32.mrb[5].mxu1 }
 0x104   :  { %219 = vst [vmem:[#allocation2 + $0x20] sm:$0xff] %v156_v3  ;;  %227 = vst [vmem:[#allocation2 + $0x60] sm:$0xff] %v196_v4 }
 0x106   :  { %v323_v5 = vpop.f32.mrb[6].mxu0  ;;  %v335_v6 = vpop.f32.mrb[6].mxu1 }
 0x107   :  { %222 = vst [vmem:[#allocation2 + $0x38] sm:$0xff] %v323_v5  ;;  %230 = vst [vmem:[#allocation2 + $0x78] sm:$0xff] %v335_v6  ;;  %v166_v7 = vpop.f32.mrb[7].mxu0  ;;  %v206_v8 = vpop.f32.mrb[7].mxu1 }
 0x108   :  { %221 = vst [vmem:[#allocation2 + $0x30] sm:$0xff] %v166_v7  ;;  %229 = vst [vmem:[#allocation2 + $0x70] sm:$0xff] %v206_v8 }
 0x109   :  { %398 = shalt.err (!%p395_p4)
}
 0x10a   :  { %s399_s2 = scalar_lea.hbm %s566_s3, 2048 }
 0x10b   :  { %p400_p5 = scmp.ne.s32.totalorder %s566_s3, %s399_s2  ;;  %p403_p6 = scmp.lt.u32.totalorder %s399_s2, %s566_s3 }
 0x10d   :  { %p405_p7 = pnand %p403_p6, %p400_p5 }
 0x10f   :  { %408 = shalt.err (!%p405_p7)
}
 0x110   :  { %s412_s28 = smov 128   ;;  %s413_s29 = smov 8  }
 0x111   :  { %242 = dma.vmem_to_hbm [thread:$0]  %s237_s21, 2048, %s566_s3, [#allocation3], %s412_s28, %s412_s28, %s413_s29  }
 0x112   :  { %409 = dma.done.wait [#allocation3], 2048  }
 0x113   :  { %410 = vsyncadd [#allocation3], 4294965248 }
 0x114   :  { %246 = vsyncpa [#allocation3], 1 }

</bundles_post_ra>
